<compile_context>
chip_gen: v7x
topology: tpu7x:2x2x1
jax: 0.10.0
libtpu: 0.0.40
codegen_flags: <defaults>
</compile_context>

<pallas_src>
import functools

import jax
import jax.numpy as jnp
from jax import lax
from jax.experimental import pallas as pl
from jax.experimental.pallas import tpu as pltpu

EPS = 1e-5          # nn.InstanceNorm2d default
NEG_SLOPE = 0.01    # LeakyReLU negative_slope from act_name


def _unet_block_kernel(x_ref, masks_ref, w1_ref, w2_ref, gb_ref, o_ref,
                       *, H, W, K, compute_dtype):
    """Fused (conv -> IN -> LReLU) x2 for one sample.

    x_ref    : (1, Cin_p, H*W)   flattened NCHW sample (lane-dense spatial)
    masks_ref: (8, H*W) f32      rows 0..K-1 = row-validity (dr = kh-R),
                                 rows K..2K-1 = col-validity (dc = kw-R)
    w1_ref   : (Cout, K*K*Cin_p) packed weights, compute_dtype
    w2_ref   : (Cout, K*K*Cout)  packed weights, compute_dtype
    gb_ref   : (Cout, 4) f32     columns = [gamma1, beta1, gamma2, beta2]
    o_ref    : (1, Cout, H*W)
    """
    HW = H * W
    R = K // 2
    masks = masks_ref[...]                                       # (8, HW) f32

    def im2col(x):
        """x: (C, HW) f32 -> (K*K*C, HW) slab in compute_dtype.

        Slab sublane order is (kw-major, kh, channel); the packed weights use
        the same order.  'Same' zero padding is realized by rolling over the
        flattened spatial axis (XLU) and masking wrapped / out-of-image
        contributions.  Row masks are applied before the column roll (valid
        because the column mask kills every position where the column roll
        crosses a row boundary).
        """
        rows = []
        for kh in range(K):
            dr = kh - R
            r = x if dr == 0 else pltpu.roll(x, (-dr * W) % HW, axis=1)
            if dr != 0:
                r = r * masks[kh:kh + 1, :]
            rows.append(r)
        stack = jnp.concatenate(rows, axis=0)                    # (K*C, HW)
        cols = []
        for kw in range(K):
            dc = kw - R
            s = stack if dc == 0 else pltpu.roll(stack, (-dc) % HW, axis=1)
            if dc != 0:
                s = s * masks[K + kw:K + kw + 1, :]
            cols.append(s)
        return jnp.concatenate(cols, axis=0).astype(compute_dtype)   # (K*K*C, HW)

    def stage(x_f32, w_ref, gamma, beta):
        slab = im2col(x_f32)
        # Single MXU contraction per stage (bf16 inputs, f32 accumulation).
        y = jnp.dot(w_ref[...], slab, preferred_element_type=jnp.float32)
        # InstanceNorm: per-channel spatial stats (biased variance) + affine, f32.
        mean = jnp.mean(y, axis=1, keepdims=True)
        var = jnp.mean(jnp.square(y - mean), axis=1, keepdims=True)
        y = (y - mean) * lax.rsqrt(var + EPS)
        y = y * gamma + beta
        # LeakyReLU(0.01)
        return jnp.where(y >= 0.0, y, NEG_SLOPE * y)

    gb = gb_ref[...]                                             # (Cout, 4) f32
    y1 = stage(x_ref[0].astype(jnp.float32), w1_ref, gb[:, 0:1], gb[:, 1:2])
    y2 = stage(y1, w2_ref, gb[:, 2:3], gb[:, 3:4])
    o_ref[0] = y2.astype(o_ref.dtype)


def _pack_weight(w_oihw, cin_pad):
    """PyTorch (Cout, Cin, KH, KW) -> (Cout, KW*KH*cin_pad), matching the im2col
    slab sublane order (kw-major, kh, channel). Extra input channels are zero."""
    cout, cin, kh, kw = w_oihw.shape
    if cin_pad > cin:
        w_oihw = jnp.pad(w_oihw, ((0, 0), (0, cin_pad - cin), (0, 0), (0, 0)))
    return jnp.transpose(w_oihw, (0, 3, 2, 1)).reshape(cout, kh * kw * cin_pad)


def _border_masks(H, W, K):
    """Static border-validity masks over the flattened spatial axis, padded to
    8 sublanes: rows 0..K-1 = row masks (dr=kh-R), rows K..2K-1 = col masks."""
    R = K // 2
    q = jnp.arange(H * W, dtype=jnp.int32)
    row, col = q // W, q % W
    m = []
    for kh in range(K):
        d = kh - R
        m.append((row + d >= 0) & (row + d < H))
    for kw in range(K):
        d = kw - R
        m.append((col + d >= 0) & (col + d < W))
    m = jnp.stack(m).astype(jnp.float32)                          # (2K, HW)
    pad = (-m.shape[0]) % 8
    if pad:
        m = jnp.concatenate([m, jnp.zeros((pad, H * W), jnp.float32)], axis=0)
    return m


def unet_basic_block(x_nchw, params, *, compute_dtype=jnp.bfloat16):
    """Forward pass of UnetBasicBlock. Input/output are NCHW like PyTorch."""
    N, Cin, H, W = x_nchw.shape
    w1, w2 = params["w1"], params["w2"]
    Cout, _, K, _ = w1.shape
    HW = H * W
    assert HW % 128 == 0, "flattened spatial extent must be lane-aligned"
    cin_p = -(-Cin // 8) * 8                     # pad stage-1 channels to sublanes

    x_flat = x_nchw.reshape(N, Cin, HW)          # free (contiguous) reshape
    if cin_p > Cin:
        x_flat = jnp.pad(x_flat, ((0, 0), (0, cin_p - Cin), (0, 0)))

    masks = _border_masks(H, W, K)                               # (8, HW)
    w1m = _pack_weight(w1, cin_p).astype(compute_dtype)          # (Cout, K*K*cin_p)
    w2m = _pack_weight(w2, Cout).astype(compute_dtype)           # (Cout, K*K*Cout)
    gb = jnp.stack([params["g1"], params["b1"],
                    params["g2"], params["b2"]], axis=1).astype(jnp.float32)

    kernel = functools.partial(_unet_block_kernel, H=H, W=W, K=K,
                               compute_dtype=compute_dtype)

    out = pl.pallas_call(
        kernel,
        out_shape=jax.ShapeDtypeStruct((N, Cout, HW), x_nchw.dtype),
        grid_spec=pltpu.PrefetchScalarGridSpec(
            num_scalar_prefetch=0,
            grid=(N,),
            in_specs=[
                pl.BlockSpec((1, cin_p, HW), lambda n: (n, 0, 0)),
                pl.BlockSpec(masks.shape, lambda n: (0, 0)),
                pl.BlockSpec(w1m.shape, lambda n: (0, 0)),
                pl.BlockSpec(w2m.shape, lambda n: (0, 0)),
                pl.BlockSpec(gb.shape, lambda n: (0, 0)),
            ],
            out_specs=pl.BlockSpec((1, Cout, HW), lambda n: (n, 0, 0)),
        ),
        compiler_params=pltpu.CompilerParams(
            dimension_semantics=("parallel",)),
    )(x_flat, masks, w1m, w2m, gb)
    return out.reshape(N, Cout, H, W)


def _reference_block(x_nchw, params):
    """Pure-JAX reference (XLA conv, NCHW, f32) for a correctness sanity check."""
    def stage(x, w, g, b):
        k = w.shape[-1]
        p = (k - 1) // 2
        y = lax.conv_general_dilated(
            x, w, window_strides=(1, 1), padding=((p, p), (p, p)),
            dimension_numbers=("NCHW", "OIHW", "NCHW"))
        mean = jnp.mean(y, axis=(2, 3), keepdims=True)
        var = jnp.mean((y - mean) ** 2, axis=(2, 3), keepdims=True)
        y = (y - mean) / jnp.sqrt(var + EPS)
        y = y * g.reshape(1, -1, 1, 1) + b.reshape(1, -1, 1, 1)
        return jnp.where(y >= 0, y, NEG_SLOPE * y)

    y = stage(x_nchw, params["w1"], params["g1"], params["b1"])
    y = stage(y, params["w2"], params["g2"], params["b2"])
    return y


if __name__ == "__main__":
    # UnetBasicBlock(spatial_dims=2, in_channels=4, out_channels=8,
    #                kernel_size=3, stride=1)
    N, CIN, COUT, H, W, K = 2, 4, 8, 16, 16, 3

    key = jax.random.PRNGKey(0)
    k1, k2, kx = jax.random.split(key, 3)
    params = {
        # conv weights in PyTorch OIHW layout (Cout, Cin, KH, KW), no bias
        "w1": jax.random.normal(k1, (COUT, CIN, K, K), jnp.float32) * 0.1,
        "w2": jax.random.normal(k2, (COUT, COUT, K, K), jnp.float32) * 0.1,
        # InstanceNorm affine params (PyTorch init: weight=1, bias=0)
        "g1": jnp.ones((COUT,), jnp.float32),
        "b1": jnp.zeros((COUT,), jnp.float32),
        "g2": jnp.ones((COUT,), jnp.float32),
        "b2": jnp.zeros((COUT,), jnp.float32),
    }

    x = jax.random.normal(kx, (N, CIN, H, W), jnp.float32)   # NCHW like PyTorch

    out = jax.block_until_ready(unet_basic_block(x, params))
    ref = jax.block_until_ready(_reference_block(x, params))

    assert out.shape == (N, COUT, H, W), out.shape
    max_err = float(jnp.max(jnp.abs(out - ref)))
    # bf16 MXU inputs (f32 accumulation + f32 InstanceNorm stats) vs the all-f32
    # XLA reference: expected max-abs deviation ~1e-3..1e-2 on the IN-normalized
    # (unit-variance) outputs.  compute_dtype=jnp.float32 recovers <5e-3.
    assert max_err < 2.5e-2, f"mismatch vs reference: {max_err}"
    print("KERNEL_OK")
</pallas_src>

<mosaic_0001>
module attributes {stable_mosaic.version = 11 : i64} {
  func.func @_unet_block_kernel(%arg0: i32, %arg1: memref<1x8x256xf32, #tpu.memory_space<vmem>>, %arg2: memref<8x256xf32, #tpu.memory_space<vmem>>, %arg3: memref<8x72xbf16, #tpu.memory_space<vmem>>, %arg4: memref<8x72xbf16, #tpu.memory_space<vmem>>, %arg5: memref<8x4xf32, #tpu.memory_space<vmem>>, %arg6: memref<1x8x256xf32, #tpu.memory_space<vmem>>) attributes {dimension_semantics = [#tpu.dimension_semantics<parallel>], iteration_bounds = array<i64: 2>, scalar_prefetch = 0 : i64, scratch_operands = 0 : i64, tpu.core_type = #tpu.core_type<tc>, window_params = [{transform_indices = @transform_0, window_bounds = array<i64: 1, 8, 256>}, {pipeline_mode = #tpu.pipeline_mode<synchronous>, transform_indices = @transform_1, window_bounds = array<i64: 8, 256>}, {pipeline_mode = #tpu.pipeline_mode<synchronous>, transform_indices = @transform_2, window_bounds = array<i64: 8, 72>}, {pipeline_mode = #tpu.pipeline_mode<synchronous>, transform_indices = @transform_3, window_bounds = array<i64: 8, 72>}, {pipeline_mode = #tpu.pipeline_mode<synchronous>, transform_indices = @transform_4, window_bounds = array<i64: 8, 4>}, {transform_indices = @transform_5, window_bounds = array<i64: 1, 8, 256>}]} {
    %c0 = arith.constant 0 : index
    %c0_0 = arith.constant 0 : index
    %0 = vector.load %arg2[%c0, %c0_0] : memref<8x256xf32, #tpu.memory_space<vmem>>, vector<8x256xf32>
    %c0_1 = arith.constant 0 : index
    %c0_2 = arith.constant 0 : index
    %1 = vector.load %arg5[%c0_1, %c0_2] : memref<8x4xf32, #tpu.memory_space<vmem>>, vector<8x4xf32>
    %c0_3 = arith.constant 0 : index
    %c0_4 = arith.constant 0 : index
    %c0_5 = arith.constant 0 : index
    %2 = vector.load %arg1[%c0_3, %c0_4, %c0_5] : memref<1x8x256xf32, #tpu.memory_space<vmem>>, vector<1x8x256xf32>
    %3 = vector.shape_cast %2 : vector<1x8x256xf32> to vector<8x256xf32>
    %4 = vector.extract_strided_slice %1 {offsets = [0, 0], sizes = [8, 1], strides = [1, 1]} : vector<8x4xf32> to vector<8x1xf32>
    %5 = vector.extract_strided_slice %1 {offsets = [0, 1], sizes = [8, 1], strides = [1, 1]} : vector<8x4xf32> to vector<8x1xf32>
    %c16_i32 = arith.constant 16 : i32
    %6 = tpu.dynamic_rotate %3 by %c16_i32 dim 1 : vector<8x256xf32>, i32 -> vector<8x256xf32>
    %7 = vector.extract_strided_slice %0 {offsets = [0, 0], sizes = [1, 256], strides = [1, 1]} : vector<8x256xf32> to vector<1x256xf32>
    %8 = vector.broadcast %7 : vector<1x256xf32> to vector<8x256xf32>
    %9 = arith.mulf %6, %8 : vector<8x256xf32>
    %c240_i32 = arith.constant 240 : i32
    %10 = tpu.dynamic_rotate %3 by %c240_i32 dim 1 : vector<8x256xf32>, i32 -> vector<8x256xf32>
    %11 = vector.extract_strided_slice %0 {offsets = [2, 0], sizes = [1, 256], strides = [1, 1]} : vector<8x256xf32> to vector<1x256xf32>
    %12 = vector.broadcast %11 : vector<1x256xf32> to vector<8x256xf32>
    %13 = arith.mulf %10, %12 : vector<8x256xf32>
    %14 = tpu.concatenate %9, %3, %13 in 0 : vector<8x256xf32>, vector<8x256xf32>, vector<8x256xf32> -> vector<24x256xf32>
    %c1_i32 = arith.constant 1 : i32
    %15 = tpu.dynamic_rotate %14 by %c1_i32 dim 1 : vector<24x256xf32>, i32 -> vector<24x256xf32>
    %16 = vector.extract_strided_slice %0 {offsets = [3, 0], sizes = [1, 256], strides = [1, 1]} : vector<8x256xf32> to vector<1x256xf32>
    %17 = vector.broadcast %16 : vector<1x256xf32> to vector<24x256xf32>
    %18 = arith.mulf %15, %17 : vector<24x256xf32>
    %c255_i32 = arith.constant 255 : i32
    %19 = tpu.dynamic_rotate %14 by %c255_i32 dim 1 : vector<24x256xf32>, i32 -> vector<24x256xf32>
    %20 = vector.extract_strided_slice %0 {offsets = [5, 0], sizes = [1, 256], strides = [1, 1]} : vector<8x256xf32> to vector<1x256xf32>
    %21 = vector.broadcast %20 : vector<1x256xf32> to vector<24x256xf32>
    %22 = arith.mulf %19, %21 : vector<24x256xf32>
    %23 = tpu.concatenate %18, %14, %22 in 0 : vector<24x256xf32>, vector<24x256xf32>, vector<24x256xf32> -> vector<72x256xf32>
    %24 = arith.truncf %23 : vector<72x256xf32> to vector<72x256xbf16>
    %c0_6 = arith.constant 0 : index
    %c0_7 = arith.constant 0 : index
    %25 = vector.load %arg3[%c0_6, %c0_7] : memref<8x72xbf16, #tpu.memory_space<vmem>>, vector<8x72xbf16>
    %cst = arith.constant dense<0.000000e+00> : vector<8x256xf32>
    %26 = tpu.matmul %25, %24, %cst {dimension_numbers = #tpu.dot_dimension_numbers<[1], [0], [0], [1], [0, 0, 1, 1], [], []>} : vector<8x72xbf16>, vector<72x256xbf16>, vector<8x256xf32> -> vector<8x256xf32>
    %cst_8 = arith.constant dense<0.000000e+00> : vector<8xf32>
    %27 = vector.multi_reduction <add>, %26, %cst_8 [1] : vector<8x256xf32> to vector<8xf32>
    %28 = vector.shape_cast %27 : vector<8xf32> to vector<8x1xf32>
    %cst_9 = arith.constant 2.560000e+02 : f32
    %29 = vector.broadcast %cst_9 : f32 to vector<8x1xf32>
    %30 = arith.divf %28, %29 : vector<8x1xf32>
    %31 = vector.broadcast %30 : vector<8x1xf32> to vector<8x256xf32>
    %32 = arith.subf %26, %31 : vector<8x256xf32>
    %33 = arith.mulf %32, %32 : vector<8x256xf32>
    %cst_10 = arith.constant dense<0.000000e+00> : vector<8xf32>
    %34 = vector.multi_reduction <add>, %33, %cst_10 [1] : vector<8x256xf32> to vector<8xf32>
    %35 = vector.shape_cast %34 : vector<8xf32> to vector<8x1xf32>
    %cst_11 = arith.constant 2.560000e+02 : f32
    %36 = vector.broadcast %cst_11 : f32 to vector<8x1xf32>
    %37 = arith.divf %35, %36 : vector<8x1xf32>
    %38 = vector.broadcast %30 : vector<8x1xf32> to vector<8x256xf32>
    %39 = arith.subf %26, %38 : vector<8x256xf32>
    %cst_12 = arith.constant 9.99999974E-6 : f32
    %40 = vector.broadcast %cst_12 : f32 to vector<8x1xf32>
    %41 = arith.addf %37, %40 : vector<8x1xf32>
    %42 = math.rsqrt %41 : vector<8x1xf32>
    %43 = vector.broadcast %42 : vector<8x1xf32> to vector<8x256xf32>
    %44 = arith.mulf %39, %43 : vector<8x256xf32>
    %45 = vector.broadcast %4 : vector<8x1xf32> to vector<8x256xf32>
    %46 = arith.mulf %44, %45 : vector<8x256xf32>
    %47 = vector.broadcast %5 : vector<8x1xf32> to vector<8x256xf32>
    %48 = arith.addf %46, %47 : vector<8x256xf32>
    %cst_13 = arith.constant 0.000000e+00 : f32
    %49 = vector.broadcast %cst_13 : f32 to vector<8x256xf32>
    %50 = arith.cmpf oge, %48, %49 : vector<8x256xf32>
    %cst_14 = arith.constant 0.00999999977 : f32
    %51 = vector.broadcast %cst_14 : f32 to vector<8x256xf32>
    %52 = arith.mulf %51, %48 : vector<8x256xf32>
    %53 = arith.select %50, %48, %52 : vector<8x256xi1>, vector<8x256xf32>
    %54 = vector.extract_strided_slice %1 {offsets = [0, 2], sizes = [8, 1], strides = [1, 1]} : vector<8x4xf32> to vector<8x1xf32>
    %55 = vector.extract_strided_slice %1 {offsets = [0, 3], sizes = [8, 1], strides = [1, 1]} : vector<8x4xf32> to vector<8x1xf32>
    %c16_i32_15 = arith.constant 16 : i32
    %56 = tpu.dynamic_rotate %53 by %c16_i32_15 dim 1 : vector<8x256xf32>, i32 -> vector<8x256xf32>
    %57 = vector.extract_strided_slice %0 {offsets = [0, 0], sizes = [1, 256], strides = [1, 1]} : vector<8x256xf32> to vector<1x256xf32>
    %58 = vector.broadcast %57 : vector<1x256xf32> to vector<8x256xf32>
    %59 = arith.mulf %56, %58 : vector<8x256xf32>
    %c240_i32_16 = arith.constant 240 : i32
    %60 = tpu.dynamic_rotate %53 by %c240_i32_16 dim 1 : vector<8x256xf32>, i32 -> vector<8x256xf32>
    %61 = vector.extract_strided_slice %0 {offsets = [2, 0], sizes = [1, 256], strides = [1, 1]} : vector<8x256xf32> to vector<1x256xf32>
    %62 = vector.broadcast %61 : vector<1x256xf32> to vector<8x256xf32>
    %63 = arith.mulf %60, %62 : vector<8x256xf32>
    %64 = tpu.concatenate %59, %53, %63 in 0 : vector<8x256xf32>, vector<8x256xf32>, vector<8x256xf32> -> vector<24x256xf32>
    %c1_i32_17 = arith.constant 1 : i32
    %65 = tpu.dynamic_rotate %64 by %c1_i32_17 dim 1 : vector<24x256xf32>, i32 -> vector<24x256xf32>
    %66 = vector.extract_strided_slice %0 {offsets = [3, 0], sizes = [1, 256], strides = [1, 1]} : vector<8x256xf32> to vector<1x256xf32>
    %67 = vector.broadcast %66 : vector<1x256xf32> to vector<24x256xf32>
    %68 = arith.mulf %65, %67 : vector<24x256xf32>
    %c255_i32_18 = arith.constant 255 : i32
    %69 = tpu.dynamic_rotate %64 by %c255_i32_18 dim 1 : vector<24x256xf32>, i32 -> vector<24x256xf32>
    %70 = vector.extract_strided_slice %0 {offsets = [5, 0], sizes = [1, 256], strides = [1, 1]} : vector<8x256xf32> to vector<1x256xf32>
    %71 = vector.broadcast %70 : vector<1x256xf32> to vector<24x256xf32>
    %72 = arith.mulf %69, %71 : vector<24x256xf32>
    %73 = tpu.concatenate %68, %64, %72 in 0 : vector<24x256xf32>, vector<24x256xf32>, vector<24x256xf32> -> vector<72x256xf32>
    %74 = arith.truncf %73 : vector<72x256xf32> to vector<72x256xbf16>
    %c0_19 = arith.constant 0 : index
    %c0_20 = arith.constant 0 : index
    %75 = vector.load %arg4[%c0_19, %c0_20] : memref<8x72xbf16, #tpu.memory_space<vmem>>, vector<8x72xbf16>
    %cst_21 = arith.constant dense<0.000000e+00> : vector<8x256xf32>
    %76 = tpu.matmul %75, %74, %cst_21 {dimension_numbers = #tpu.dot_dimension_numbers<[1], [0], [0], [1], [0, 0, 1, 1], [], []>} : vector<8x72xbf16>, vector<72x256xbf16>, vector<8x256xf32> -> vector<8x256xf32>
    %cst_22 = arith.constant dense<0.000000e+00> : vector<8xf32>
    %77 = vector.multi_reduction <add>, %76, %cst_22 [1] : vector<8x256xf32> to vector<8xf32>
    %78 = vector.shape_cast %77 : vector<8xf32> to vector<8x1xf32>
    %cst_23 = arith.constant 2.560000e+02 : f32
    %79 = vector.broadcast %cst_23 : f32 to vector<8x1xf32>
    %80 = arith.divf %78, %79 : vector<8x1xf32>
    %81 = vector.broadcast %80 : vector<8x1xf32> to vector<8x256xf32>
    %82 = arith.subf %76, %81 : vector<8x256xf32>
    %83 = arith.mulf %82, %82 : vector<8x256xf32>
    %cst_24 = arith.constant dense<0.000000e+00> : vector<8xf32>
    %84 = vector.multi_reduction <add>, %83, %cst_24 [1] : vector<8x256xf32> to vector<8xf32>
    %85 = vector.shape_cast %84 : vector<8xf32> to vector<8x1xf32>
    %cst_25 = arith.constant 2.560000e+02 : f32
    %86 = vector.broadcast %cst_25 : f32 to vector<8x1xf32>
    %87 = arith.divf %85, %86 : vector<8x1xf32>
    %88 = vector.broadcast %80 : vector<8x1xf32> to vector<8x256xf32>
    %89 = arith.subf %76, %88 : vector<8x256xf32>
    %cst_26 = arith.constant 9.99999974E-6 : f32
    %90 = vector.broadcast %cst_26 : f32 to vector<8x1xf32>
    %91 = arith.addf %87, %90 : vector<8x1xf32>
    %92 = math.rsqrt %91 : vector<8x1xf32>
    %93 = vector.broadcast %92 : vector<8x1xf32> to vector<8x256xf32>
    %94 = arith.mulf %89, %93 : vector<8x256xf32>
    %95 = vector.broadcast %54 : vector<8x1xf32> to vector<8x256xf32>
    %96 = arith.mulf %94, %95 : vector<8x256xf32>
    %97 = vector.broadcast %55 : vector<8x1xf32> to vector<8x256xf32>
    %98 = arith.addf %96, %97 : vector<8x256xf32>
    %cst_27 = arith.constant 0.000000e+00 : f32
    %99 = vector.broadcast %cst_27 : f32 to vector<8x256xf32>
    %100 = arith.cmpf oge, %98, %99 : vector<8x256xf32>
    %cst_28 = arith.constant 0.00999999977 : f32
    %101 = vector.broadcast %cst_28 : f32 to vector<8x256xf32>
    %102 = arith.mulf %101, %98 : vector<8x256xf32>
    %103 = arith.select %100, %98, %102 : vector<8x256xi1>, vector<8x256xf32>
    %c0_29 = arith.constant 0 : index
    %c0_30 = arith.constant 0 : index
    %c0_31 = arith.constant 0 : index
    %104 = vector.load %arg6[%c0_29, %c0_30, %c0_31] : memref<1x8x256xf32, #tpu.memory_space<vmem>>, vector<1x8x256xf32>
    %105 = vector.shape_cast %104 : vector<1x8x256xf32> to vector<8x256xf32>
    %106 = vector.shape_cast %103 : vector<8x256xf32> to vector<1x8x256xf32>
    tpu.vector_store %arg6[%c0_29, %c0_30, %c0_31], %106 {strides = array<i32>} : memref<1x8x256xf32, #tpu.memory_space<vmem>>, vector<1x8x256xf32>,
    return
  }
  func.func @transform_0(%arg0: i32) -> (i32, i32, i32) {
    %c0_i32 = arith.constant 0 : i32
    %c0_i32_0 = arith.constant 0 : i32
    %c0_i32_1 = arith.constant 0 : i32
    return %arg0, %c0_i32, %c0_i32_0 : i32, i32, i32
  }
  func.func @transform_1(%arg0: i32) -> (i32, i32) {
    %c0_i32 = arith.constant 0 : i32
    %c0_i32_0 = arith.constant 0 : i32
    %c0_i32_1 = arith.constant 0 : i32
    return %c0_i32, %c0_i32_0 : i32, i32
  }
  func.func @transform_2(%arg0: i32) -> (i32, i32) {
    %c0_i32 = arith.constant 0 : i32
    %c0_i32_0 = arith.constant 0 : i32
    %c0_i32_1 = arith.constant 0 : i32
    return %c0_i32, %c0_i32_0 : i32, i32
  }
  func.func @transform_3(%arg0: i32) -> (i32, i32) {
    %c0_i32 = arith.constant 0 : i32
    %c0_i32_0 = arith.constant 0 : i32
    %c0_i32_1 = arith.constant 0 : i32
    return %c0_i32, %c0_i32_0 : i32, i32
  }
  func.func @transform_4(%arg0: i32) -> (i32, i32) {
    %c0_i32 = arith.constant 0 : i32
    %c0_i32_0 = arith.constant 0 : i32
    %c0_i32_1 = arith.constant 0 : i32
    return %c0_i32, %c0_i32_0 : i32, i32
  }
  func.func @transform_5(%arg0: i32) -> (i32, i32, i32) {
    %c0_i32 = arith.constant 0 : i32
    %c0_i32_0 = arith.constant 0 : i32
    %c0_i32_1 = arith.constant 0 : i32
    return %arg0, %c0_i32, %c0_i32_0 : i32, i32, i32
  }
}

</mosaic_0001>

<bundles_post_ra>
// kernel: tpu_custom_call.1
= control target key start
LH: loop header
LB: loop body
LE: loop exit
PB: predicated region body
PF: predicated region fallthrough
CT: control target
= control target key end

     0   :  { %10 = vsyncpa [#allocation3], 0  ;;  %s1381_s0 = inlined_call_operand.hbm [shape: f32[2,8,256], index: 0, kind: input, shape index: {}]   ;;  %s1382_s1 = inlined_call_operand.hbm [shape: f32[8,256], index: 1, kind: input, shape index: {}]   ;;  %s1383_s2 = inlined_call_operand.vmem [shape: bf16[8,72], index: 2, kind: input, shape index: {}]   ;;  %s1384_s3 = inlined_call_operand.vmem [shape: bf16[8,72], index: 3, kind: input, shape index: {}]   ;;  %s1385_s4 = inlined_call_operand.vmem [shape: f32[8,4], index: 4, kind: input, shape index: {}]   ;;  %s1386_s5 = inlined_call_operand.hbm [shape: f32[2,8,256], index: 5, kind: output, shape index: {}]  }
   0x1   :  { %12 = vsyncpa [#allocation3 + $0x1], 0 }
   0x2   :  { %13 = vsyncpa [#allocation6], 0 }
   0x3   :  { %14 = vsyncpa [#allocation4], 0 }
   0x4   :  { %16 = vsyncpa [#allocation4 + $0x1], 0  ;;  %s984_s18 = smov 0   ;;  %s986_s19 = smov 0  }
   0x5   :  { %s988_s20 = smov 0   ;;  %s990_s21 = smov 0  }
   0x6 LB: > { %s1005_s22 = sadd.s32 4294967295, %s941_s21   ;;  %s717_s23 = sadd.s32 4294967294, %s941_s21   ;;  %s941_s21 = sphi %s990_s21, %s1410_s21   ;;  %s937_s20 = sphi %s988_s20, %s1409_s20   ;;  %s933_s19 = sphi %s986_s19, %s1408_s19   ;;  %s929_s18 = sphi %s984_s18, %s1407_s18  }
   0x7   : > { %p42_p0 = scmp.ne.s32.totalorder %s933_s19, %s929_s18  ;;  %p1387_p1 = scmp.eq.s32.totalorder %s1005_s22, 0 }
   0x8   : > { %p156_p3 = scmp.eq.s32.totalorder %s717_s23, 1  ;;  %p718_p5 = scmp.ge.s32.totalorder %s941_s21, 1 }
   0x9   : > { %p1014_p4 = por %p1387_p1, %p42_p0  ;;  %p163_p7 = scmp.lt.s32.totalorder %s941_s21, 3 }
   0xa   : > { %p1019_p6 = por %p156_p3, %p42_p0  ;;  %s943_s27 = smov [#allocation5]  }
   0xb   : > { %s1390_s24 = scalar_select %p1014_p4, 1, 0 }
   0xc   : > { %s1391_s25 = scalar_select %p1019_p6, 1, 0 }
   0xd   : > { %p1024_p8 = pnand %p718_p5, %p163_p7  ;;  %s176_s28 = sshll.u32 %s943_s27, 4  ;;  %s177_s28 = int_to_ptr.vmem [resolvable:$true] %s176_s28 }
   0xe   : > { %s1032_s29 = sadd.s32 1, %s941_s21   ;;  %s29_s8 = sadd.s32 1, %s937_s20 }
   0xf   : > { %s1392_s26 = scalar_select %p1024_p8, 1, 0 }
  0x10   : > { %p747_p10 = pneg %p1024_p8  ;;  %s26_s6 = ssub.s32 %s941_s21, %s1032_s29 }
  0x11   : > { %p1042_p12 = scmp.eq.s32.totalorder %s26_s6, 0  ;;  %s813_s11 = scalar_lea.hbm %s1382_s1, 256 }
  0x12   : > { %p1036_p11 = pnand %p747_p10, %p1387_p1  ;;  %p814_p0 = scmp.ne.s32.totalorder %s1382_s1, %s813_s11 }
  0x13   : > { %s1394_s7 = scalar_select %p1042_p12, 1, 0 }
  0x14   : > { %p815_p3 = pneg %p1036_p11  ;;  %p820_p10 = scmp.lt.u32.totalorder %s813_s11, %s1382_s1 }
  0x16   : > { %p816_p5 = pnand %p815_p3, %p814_p0 }
  0x18   : > { %p817_p7 = pneg %p816_p5 }
  0x1a   : > { %p822_p9 = pnand %p820_p10, %p817_p7 }
  0x1c   : > { %825 = shalt.err (!%p822_p9)
}
  0x1d   : > { %s826_s16 = scalar_lea.vmem %s177_s28, 256  ;;  %p834_p6 = scmp.lt.s32.totalorder %s177_s28, %s177_s28 }
  0x1e   : > { %p827_p1 = scmp.ne.s32.totalorder %s177_s28, %s826_s16  ;;  %p835_p4 = scmp.lt.s32.totalorder %s826_s16, %s826_s16 }
  0x20   : > { %p829_p2 = pnand %p827_p1, %p815_p3  ;;  %p836_p8 = por %p835_p4, %p834_p6 }
  0x22   : > { %p830_p13 = pneg %p829_p2 }
  0x24   : > { %p837_p12 = pnand %p836_p8, %p830_p13 }
  0x26   : > { %840 = shalt.err (!%p837_p12)
}
  0x27   : > { %750 = dma.hbm_to_vmem [thread:$0]  (!%p1036_p11), %s1382_s1, 256, %s177_s28, [#allocation6]  }
  0x28   : > { %p1395_p1 = scmp.ne.s32.totalorder %s1394_s7, 0  ;;  %p37_p2 = scmp.eq.s32.totalorder %s941_s21, 0 }
  0x29   : > { %p1396_p4 = scmp.ne.s32.totalorder %s937_s20, %s933_s19  ;;  %p1397_p6 = scmp.eq.s32.totalorder %s1005_s22, 1 }
  0x2a   : > { %s1068_s27 = scalar_select %p1395_p1, %s937_s20, %s29_s8  }
  0x2b   : > { %p1076_p8 = por %p1397_p6, %p1396_p4  ;;  %p760_p9 = scmp.lt.s32.totalorder %s941_s21, 2 }
  0x2c   : > { %s196_s6 = sand.u32 1, %s937_s20   ;;  %p1399_p12 = pmov %p1396_p4 }
  0x2d   : > { %s721_s9 = sshll.u32 %s196_s6, 4  ;;  %s737_s10 = sshll.u32 %s941_s21, 8 }
  0x2e   : > { %p38_p13 = por %p37_p2, %p1399_p12  ;;  %s1089_s28 = scalar_lea.hbm %s1381_s0, %s737_s10 }
  0x2f   : > { %s200_s7 = scalar_lea.vmem [#allocation2], %s721_s9  ;;  %s197_s14 = scalar_lea.sflag [#allocation3], %s196_s6 }
  0x30   : > { %s208_s8 = sshll.u32 %s200_s7, 4  ;;  %p1091_p11 = pnand %p760_p9, %p38_p13  ;;  %s1095_s8 = int_to_ptr.vmem [resolvable:$true] %s208_s8 }
  0x31   : > { %s841_s15 = scalar_lea.hbm %s1089_s28, 256  ;;  %s846_s23 = scalar_lea.hbm %s1381_s0, 512 }
  0x32   : > { %p842_p0 = scmp.ne.s32.totalorder %s1089_s28, %s841_s15  ;;  %p843_p3 = pneg %p1091_p11 }
  0x33   : > { %p847_p10 = scmp.lt.u32.totalorder %s1089_s28, %s1381_s0  ;;  %p848_p1 = scmp.lt.u32.totalorder %s846_s23, %s841_s15 }
  0x34   : > { %p844_p5 = pnand %p843_p3, %p842_p0  ;;  %p850_p4 = scmp.lt.u32.totalorder %s841_s15, %s1089_s28 }
  0x35   : > { %p849_p2 = por %p848_p1, %p847_p10 }
  0x36   : > { %p845_p7 = pneg %p844_p5 }
  0x37   : > { %p851_p6 = por %p850_p4, %p849_p2 }
  0x39   : > { %p852_p9 = pnand %p851_p6, %p845_p7 }
  0x3b   : > { %855 = shalt.err (!%p852_p9)
}
  0x3c   : > { %s856_s6 = scalar_lea.vmem %s1095_s8, 256  ;;  %s944_s11 = smov [#allocation2]  }
  0x3d   : > { %p857_p12 = scmp.ne.s32.totalorder %s1095_s8, %s856_s6  ;;  %s861_s12 = sshll.u32 %s944_s11, 4  ;;  %s862_s12 = int_to_ptr.vmem [resolvable:$false] %s861_s12 }
  0x3e   : > { %s863_s7 = scalar_lea.vmem %s862_s12, 512  ;;  %p864_p5 = scmp.lt.s32.totalorder %s1095_s8, %s862_s12 }
  0x3f   : > { %p859_p13 = pnand %p857_p12, %p843_p3  ;;  %p865_p10 = scmp.lt.s32.totalorder %s863_s7, %s856_s6 }
  0x41   : > { %p860_p0 = pneg %p859_p13  ;;  %p866_p1 = por %p865_p10, %p864_p5 }
  0x43   : > { %p867_p2 = pnand %p866_p1, %p860_p0 }
  0x45   : > { %870 = shalt.err (!%p867_p2)
}
  0x46   : > { %754 = dma.hbm_to_vmem [thread:$0]  (!%p1091_p11), %s1089_s28, 256, %s1095_s8, %s197_s14  }
  0x47   : > { %p1401_p7 = scmp.ne.s32.totalorder %s1392_s26, 0 }
  0x48   : > { %s1125_s15 = sand.u32 (!%p1401_p7), 1, %s933_s19   ;;  %p1402_p3 = scmp.ne.s32.totalorder (!%p1401_p7), %s1390_s24, 0 }
  0x49   : > { %217 = sbr.rel (%p1401_p7) target bundleno = 1693 (0x69d), region = 40  ;;  %s725_s16 = sshll.u32 (!%p1401_p7), %s1125_s15, 4 }
  0x4a   : > { %s220_s17 = scalar_lea.sflag (!%p1401_p7), [#allocation3], %s1125_s15  ;;  %s223_s23 = scalar_lea.vmem (!%p1401_p7), [#allocation2], %s725_s16 }
  0x50   : > { %916 = dma.done.wait (%p1402_p3), %s220_s17, 256  }
  0x51   : > { %918 = vsyncadd (%p1402_p3), %s220_s17, 4294967040  ;;  %p1403_p11 = scmp.eq.s32.totalorder %s1005_s22, 0 }
  0x53   : > { %920 = dma.done.wait (%p1403_p11), [#allocation6], 256   ;;  %p1404_p4 = pmov %p1403_p11 }
  0x54   : > { %v264_v0 = vlaneseq  ;;  %v1139_v4 = vld [vmem:[%s223_s23] sm:$0xff]  ;;  %s945_s26 = smov 112   ;;  %s946_s28 = smov 16   ;;  %v256_v6 = vld [vmem:[#allocation5 + $0x8] sm:$0xff]  ;;  %v949_v31 = vmov 0   ;;  %vm377_vm4 = vcmask 1043456  }
  0x55   : > { %922 = vsyncadd (%p1404_p4), [#allocation6], 4294967040  ;;  %v255_v5 = vld [vmem:[#allocation5] sm:$0xff]  ;;  %279 = vrot.lane.b32.xlu1 %v1139_v4, %s945_s26  ;;  %260 = vrot.lane.b32.xlu0 %v1139_v4, %s946_s28  ;;  %v1149_v9 = vld [vmem:[%s223_s23 + $0x8] sm:$0xff]  ;;  %s947_s24 = smov 1   ;;  %s948_s8 = smov 127  }
  0x56   : > { %v270_v1 = vshrl.u32 %v264_v0, 7  ;;  %v1163_v12 = vand.u32 127, %v264_v0  ;;  %416 = vmatprep.mubr.bf16.mxu0 %v949_v31  ;;  %804 = vset.pattern.permute.xlu0 %v949_v31  ;;  %vm373_vm5 = vcmask 588800   ;;  %s738_s12 = sshll.u32 %s1005_s22, 8  ;;  %s253_s7 = scalar_lea.vmem [#allocation7], %s725_s16 }
  0x57   : > { %577 = vmatprep.mubr.bf16.mxu1 %v949_v31  ;;  %v950_v31 = vmov 1   ;;  %s637_s17 = sshll.u32 %s253_s7, 4  ;;  %s623_s22 = scalar_lea.sflag [#allocation4], %s1125_s15  ;;  %s1339_s17 = int_to_ptr.vmem [resolvable:$true] %s637_s17 }
  0x58   : > { %v317_v2 = vsub.s32 3, %v270_v1  ;;  %v350_v3 = vsub.s32 5, %v270_v1  ;;  %v288_v13 = vsub.s32 2, %v270_v1  ;;  %v271_v14 = vsub.s32 0, %v270_v1  ;;  %805 = vset.pattern.permute.xlu1 %v950_v31  ;;  %s871_s16 = scalar_lea.vmem %s1339_s17, 256 }
  0x59   : > { %281 = vrot.lane.b32.xlu1 %v1149_v9, %s945_s26  ;;  %262 = vrot.lane.b32.xlu0 %v1149_v9, %s946_s28  ;;  %vm283_vm0 = vcmp.lt.s32.totalorder %v1163_v12, 112  ;;  %vm266_vm1 = vcmp.lt.s32.totalorder %v1163_v12, 16  ;;  %vm308_vm2 = vcmp.lt.s32.totalorder %v1163_v12, 1  ;;  %vm341_vm3 = vcmp.lt.s32.totalorder %v1163_v12, 127  ;;  %p872_p6 = scmp.ne.s32.totalorder %s1339_s17, %s871_s16 }
  0x5a   : > { %v1145_v7 = vrot.slane %v255_v5, %v317_v2  ;;  %v1147_v8 = vrot.slane %v255_v5, %v350_v3  ;;  %v1151_v10 = vrot.slane %v256_v6, %v317_v2  ;;  %v1153_v11 = vrot.slane %v256_v6, %v350_v3 }
  0x5b   : > { %v1166_v17 = vrot.slane %v256_v6, %v288_v13  ;;  %v1169_v18 = vrot.slane %v255_v5, %v271_v14  ;;  %v1176_v24 = vrot.slane %v256_v6, %v271_v14  ;;  %v1183_v27 = vrot.slane %v255_v5, %v288_v13  ;;  %p873_p9 = pnand %p872_p6, %p1076_p8 }
  0x5d   : > { %298 = vrot.lane.b32.xlu1 %v1139_v4, %s947_s24  ;;  %p874_p12 = pneg %p873_p9 }
  0x61   : > { %304 = vrot.lane.b32.xlu1 %v1149_v9, %s947_s24 }
  0xc7   : > { %v280_v15 = vpop.permute.xlu1 %279  ;;  %v261_v16 = vpop.permute.xlu0 %260 }
  0xcb   : > { %v282_v19 = vpop.permute.xlu1 %281  ;;  %v263_v20 = vpop.permute.xlu0 %262 }
  0xcc   : > { %v285_v21 = vsel %vm283_vm0, %v282_v19, %v280_v15  ;;  %v268_v22 = vsel %vm266_vm1, %v263_v20, %v261_v16  ;;  %v267_v26 = vsel %vm266_vm1, %v261_v16, %v263_v20  ;;  %v284_v29 = vsel %vm283_vm0, %v280_v15, %v282_v19 }
  0xcd   : > { %v295_v23 = vmul.f32 %v1166_v17, %v285_v21  ;;  %v277_v25 = vmul.f32 %v1169_v18, %v268_v22  ;;  %v278_v28 = vmul.f32 %v1176_v24, %v267_v26  ;;  %v294_v30 = vmul.f32 %v1183_v27, %v284_v29  ;;  %v372_v22 = vld [vmem:[%s1383_s2] sm:$0xf] }
  0xcf   : > { %306 = vrot.lane.b32.xlu1 %v295_v23, %s947_s24  ;;  %296 = vrot.lane.b32.xlu0 %v277_v25, %s947_s24  ;;  %v299_v32 = vpop.permute.xlu1 %298  ;;  %v367_v57 = vpack.c.bf16 %v295_v23, %v1149_v9  ;;  %v366_v63 = vpack.c.bf16 %v294_v30, %v1139_v4 }
  0xd3   : > { %331 = vrot.lane.b32.xlu1 %v1139_v4, %s948_s8  ;;  %302 = vrot.lane.b32.xlu0 %v278_v28, %s947_s24  ;;  %v305_v33 = vpop.permute.xlu1 %304 }
  0xd4   : > { %v310_v36 = vsel %vm308_vm2, %v299_v32, %v305_v33  ;;  %v313_v37 = vsel %vm308_vm2, %v305_v33, %v299_v32 }
  0xd5   : > { %v325_v41 = vmul.f32 %v1145_v7, %v313_v37  ;;  %v326_v44 = vmul.f32 %v1151_v10, %v310_v36 }
  0xd7   : > { %337 = vrot.lane.b32.xlu1 %v1149_v9, %s948_s8  ;;  %300 = vrot.lane.b32.xlu0 %v294_v30, %s947_s24 }
  0xdb   : > { %339 = vrot.lane.b32.xlu1 %v295_v23, %s948_s8  ;;  %329 = vrot.lane.b32.xlu0 %v277_v25, %s948_s8 }
  0xdf   : > { %335 = vrot.lane.b32.xlu0 %v278_v28, %s948_s8 }
  0xe3   : > { %333 = vrot.lane.b32.xlu0 %v294_v30, %s948_s8  ;;  %v1248_v30 = vld [vmem:[%s1385_s4] sm:$0xff] }
 0x141   : > { %v297_v34 = vpop.permute.xlu0 %296  ;;  %v307_v35 = vpop.permute.xlu1 %306 }
 0x145   : > { %v303_v38 = vpop.permute.xlu0 %302  ;;  %v332_v45 = vpop.permute.xlu1 %331 }
 0x146   : > { %v309_v39 = vsel %vm308_vm2, %v297_v34, %v303_v38  ;;  %v312_v40 = vsel %vm308_vm2, %v303_v38, %v297_v34 }
 0x147   : > { %v323_v42 = vmul.f32 %v1145_v7, %v312_v40  ;;  %v324_v43 = vmul.f32 %v1151_v10, %v309_v39 }
 0x149   : > { %v301_v46 = vpop.permute.xlu0 %300  ;;  %v363_v47 = vpack.c.bf16 %v326_v44, %v324_v43  ;;  %v362_v48 = vpack.c.bf16 %v325_v41, %v323_v42  ;;  %v338_v56 = vpop.permute.xlu1 %337 }
 0x14a   : > { %v311_v49 = vsel %vm308_vm2, %v301_v46, %v307_v35  ;;  %v314_v50 = vsel %vm308_vm2, %v307_v35, %v301_v46  ;;  %v343_v58 = vsel %vm341_vm3, %v332_v45, %v338_v56  ;;  %v346_v59 = vsel %vm341_vm3, %v338_v56, %v332_v45 }
 0x14b   : > { %v327_v51 = vmul.f32 %v1145_v7, %v314_v50  ;;  %v328_v52 = vmul.f32 %v1151_v10, %v311_v49  ;;  %384 = vmatprep.subr.bf16.mxu0 %v363_v47  ;;  %v358_v0 = vmul.f32 %v1147_v8, %v343_v58  ;;  %v359_v1 = vmul.f32 %v1153_v11, %v346_v59 }
 0x14c   : > { %385 = vmatpush1.bf16.msra.mxu0 %v362_v48 }
 0x14d   : > { %v330_v53 = vpop.permute.xlu0 %329  ;;  %v365_v54 = vpack.c.bf16 %v278_v28, %v328_v52  ;;  %v364_v55 = vpack.c.bf16 %v277_v25, %v327_v51  ;;  %v340_v5 = vpop.permute.xlu1 %339 }
 0x14f   : > { %386 = vmatprep.subr.bf16.mxu0 %v365_v54 }
 0x150   : > { %387 = vmatpush1.bf16.msra.mxu0 %v364_v55 }
 0x151   : > { %388 = vmatprep.subr.bf16.mxu0 %v367_v57  ;;  %v336_v60 = vpop.permute.xlu0 %335 }
 0x152   : > { %v342_v61 = vsel %vm341_vm3, %v330_v53, %v336_v60  ;;  %v345_v62 = vsel %vm341_vm3, %v336_v60, %v330_v53 }
 0x153   : > { %v356_v2 = vmul.f32 %v1147_v8, %v342_v61  ;;  %v357_v3 = vmul.f32 %v1153_v11, %v345_v62 }
 0x154   : > { %389 = vmatpush1.bf16.msra.mxu0 %v366_v63 }
 0x155   : > { %v334_v6 = vpop.permute.xlu0 %333  ;;  %v369_v9 = vpack.c.bf16 %v359_v1, %v357_v3  ;;  %v368_v13 = vpack.c.bf16 %v358_v0, %v356_v2 }
 0x156   : > { %v344_v14 = vsel %vm341_vm3, %v334_v6, %v340_v5  ;;  %v347_v15 = vsel %vm341_vm3, %v340_v5, %v334_v6 }
 0x157   : > { %v360_v4 = vmul.f32 %v1147_v8, %v344_v14  ;;  %v361_v16 = vmul.f32 %v1153_v11, %v347_v15  ;;  %390 = vmatprep.subr.bf16.mxu0 %v369_v9 }
 0x158   : > { %391 = vmatpush1.bf16.msra.mxu0 %v368_v13 }
 0x159   : > { %v370_v19 = vpack.c.bf16 %v360_v4, %v360_v4  ;;  %v371_v20 = vpack.c.bf16 %v361_v16, %v361_v16 }
 0x15b   : > { %728 = vmatprep.subr.msk.bf16.mxu0 %vm377_vm4, %v371_v20  ;;  %v379_v21 = vsel %vm377_vm4, %v370_v19, 0 }
 0x15c   : > { %393 = vmatpush1.bf16.msra.mxu0 %v379_v21 }
 0x15f   : > { %729 = vmatmul.mubr.msk.bf16.vlgmr.msra.gmra.mrb[0].mxu0 %vm373_vm5, %v372_v22 }
 0x232   : > { %v418_v23 = vpop.f32.mrb[0].mxu0 }
 0x233   : > { %v420_v25 = vpop.f32.mrb[1].mxu0 }
 0x234   : > { %v422_v26 = vpop.f32.mrb[2].mxu0  ;;  %v425_v28 = vadd.f32 %v420_v25, %v418_v23 }
 0x235   : > { %v423_v29 = vpop.f32.mrb[3].mxu0 }
 0x236   : > { %426 = vadd.xlane.f32.xlu0 %v425_v28 }
 0x24c   : > { %444 = vperm.xlu0 %804, %v1248_v30  }
 0x2c3   : > { %v427_v32 = vpop.xlane.xlu0 %426 }
 0x2c4   : > { %v429_v33 = vmul.f32 0.00390625, %v427_v32 }
 0x2c6   : > { %v430_v34 = vsub.f32 %v418_v23, %v429_v33  ;;  %v431_v35 = vsub.f32 %v420_v25, %v429_v33 }
 0x2c8   : > { %v432_v36 = vmul.f32 %v430_v34, %v430_v34  ;;  %v433_v37 = vmul.f32 %v431_v35, %v431_v35 }
 0x2ca   : > { %v434_v38 = vadd.f32 %v433_v37, %v432_v36 }
 0x2cb   : > { %v445_v43 = vpop.permute.xlu0 %444 }
 0x2cc   : > { %435 = vadd.xlane.f32.xlu1 %v434_v38 }
 0x2dd   : > { %450 = vperm.xlu1 %805, %v1248_v30  }
 0x359   : > { %v436_v39 = vpop.xlane.xlu1 %435 }
 0x35a   : > { %v437_v40 = vmul.f32 0.00390625, %v436_v39 }
 0x35c   : > { %v438_v41 = vadd.f32 1e-05, %v437_v40 }
 0x35d   : > { %v451_v46 = vpop.permute.xlu1 %450 }
 0x35e   : > { %809 = vrsqrt.f32 %v438_v41 }
 0x368   : > { %v810_v42 = vpop.eup %809 }
 0x369   : > { %v440_v44 = vmul.f32 %v810_v42, %v430_v34  ;;  %v441_v45 = vmul.f32 %v810_v42, %v431_v35 }
 0x36b   : > { %v447_v47 = vmul.f32 %v445_v43, %v440_v44  ;;  %v448_v48 = vmul.f32 %v445_v43, %v441_v45 }
 0x36d   : > { %v453_v49 = vadd.f32 %v451_v46, %v447_v47  ;;  %v454_v50 = vadd.f32 %v451_v46, %v448_v48 }
 0x36f   : > { %vm455_vm6 = vcmp.ge.f32.partialorder %v453_v49, 0.0  ;;  %v457_v51 = vmul.f32 0.01, %v453_v49  ;;  %v458_v52 = vmul.f32 0.01, %v454_v50  ;;  %vm456_vm7 = vcmp.ge.f32.partialorder %v454_v50, 0.0 }
 0x371   : > { %v1252_v53 = vsel %vm455_vm6, %v453_v49, %v457_v51  ;;  %v460_v54 = vsel %vm456_vm7, %v454_v50, %v458_v52 }
 0x372   : > { %461 = vrot.lane.b32.xlu1 %v1252_v53, %s946_s28 }
 0x376   : > { %463 = vrot.lane.b32.xlu1 %v460_v54, %s946_s28  ;;  %s1337_s28 = scalar_lea.hbm %s1386_s5, %s738_s12 }
 0x37a   : > { %469 = vrot.lane.b32.xlu1 %v1252_v53, %s945_s26 }
 0x37e   : > { %471 = vrot.lane.b32.xlu1 %v460_v54, %s945_s26 }
 0x382   : > { %479 = vrot.lane.b32.xlu1 %v1252_v53, %s947_s24 }
 0x386   : > { %485 = vrot.lane.b32.xlu1 %v460_v54, %s947_s24 }
 0x3e4   : > { %v462_v55 = vpop.permute.xlu1 %461 }
 0x3e8   : > { %v464_v56 = vpop.permute.xlu1 %463 }
 0x3e9   : > { %v465_v57 = vsel %vm266_vm1, %v462_v55, %v464_v56  ;;  %v466_v58 = vsel %vm266_vm1, %v464_v56, %v462_v55 }
 0x3ea   : > { %v467_v59 = vmul.f32 %v466_v58, %v1169_v18  ;;  %v468_v60 = vmul.f32 %v465_v57, %v1176_v24  ;;  %v951_v57 = vmov 2   ;;  %v952_v58 = vmov 3  }
 0x3eb   : > { %806 = vset.pattern.permute.xlu0 %v951_v57  ;;  %807 = vset.pattern.permute.xlu1 %v952_v58 }
 0x3ec   : > { %477 = vrot.lane.b32.xlu1 %v467_v59, %s947_s24  ;;  %483 = vrot.lane.b32.xlu0 %v468_v60, %s947_s24  ;;  %v470_v61 = vpop.permute.xlu1 %469 }
 0x3f0   : > { %v472_v62 = vpop.permute.xlu1 %471 }
 0x3f1   : > { %v473_v63 = vsel %vm283_vm0, %v470_v61, %v472_v62  ;;  %v474_v0 = vsel %vm283_vm0, %v472_v62, %v470_v61 }
 0x3f2   : > { %v475_v1 = vmul.f32 %v473_v63, %v1183_v27  ;;  %v476_v2 = vmul.f32 %v474_v0, %v1166_v17 }
 0x3f4   : > { %487 = vrot.lane.b32.xlu1 %v476_v2, %s947_s24  ;;  %481 = vrot.lane.b32.xlu0 %v475_v1, %s947_s24  ;;  %v480_v18 = vpop.permute.xlu1 %479  ;;  %v530_v33 = vpack.c.bf16 %v476_v2, %v460_v54  ;;  %v529_v36 = vpack.c.bf16 %v475_v1, %v1252_v53  ;;  %s953_s24 = smov [#allocation7]  }
 0x3f8   : > { %503 = vrot.lane.b32.xlu1 %v1252_v53, %s948_s8  ;;  %501 = vrot.lane.b32.xlu0 %v467_v59, %s948_s8  ;;  %v486_v24 = vpop.permute.xlu1 %485 }
 0x3f9   : > { %v490_v17 = vsel %vm308_vm2, %v480_v18, %v486_v24  ;;  %v493_v27 = vsel %vm308_vm2, %v486_v24, %v480_v18 }
 0x3fa   : > { %v497_v13 = vmul.f32 %v493_v27, %v1145_v7  ;;  %v498_v4 = vmul.f32 %v490_v17, %v1151_v10 }
 0x3fc   : > { %509 = vrot.lane.b32.xlu1 %v460_v54, %s948_s8  ;;  %507 = vrot.lane.b32.xlu0 %v468_v60, %s948_s8  ;;  %v535_v54 = vld [vmem:[%s1384_s3] sm:$0xf] }
 0x400   : > { %511 = vrot.lane.b32.xlu1 %v476_v2, %s948_s8  ;;  %505 = vrot.lane.b32.xlu0 %v475_v1, %s948_s8  ;;  %s875_s8 = sshll.u32 %s953_s24, 4  ;;  %s876_s8 = int_to_ptr.vmem [resolvable:$false] %s875_s8 }
 0x401   : > { %s877_s13 = scalar_lea.vmem %s876_s8, 512  ;;  %p878_p13 = scmp.lt.s32.totalorder %s1339_s17, %s876_s8 }
 0x402   : > { %p879_p0 = scmp.lt.s32.totalorder %s877_s13, %s871_s16 }
 0x404   : > { %p880_p5 = por %p879_p0, %p878_p13 }
 0x406   : > { %p881_p10 = pnand %p880_p5, %p874_p12 }
 0x45e   : > { %v484_v3 = vpop.permute.xlu0 %483  ;;  %v478_v5 = vpop.permute.xlu1 %477 }
 0x45f   : > { %v489_v6 = vsel %vm308_vm2, %v478_v5, %v484_v3  ;;  %v492_v9 = vsel %vm308_vm2, %v484_v3, %v478_v5 }
 0x460   : > { %v495_v14 = vmul.f32 %v492_v9, %v1145_v7  ;;  %v496_v15 = vmul.f32 %v489_v6, %v1151_v10 }
 0x462   : > { %v526_v16 = vpack.c.bf16 %v498_v4, %v496_v15  ;;  %v525_v19 = vpack.c.bf16 %v497_v13, %v495_v14 }
 0x464   : > { %545 = vmatprep.subr.bf16.mxu1 %v526_v16 }
 0x465   : > { %546 = vmatpush1.bf16.msra.mxu1 %v525_v19 }
 0x466   : > { %v482_v20 = vpop.permute.xlu0 %481  ;;  %v488_v21 = vpop.permute.xlu1 %487 }
 0x467   : > { %v491_v22 = vsel %vm308_vm2, %v482_v20, %v488_v21  ;;  %v494_v23 = vsel %vm308_vm2, %v488_v21, %v482_v20 }
 0x468   : > { %v499_v25 = vmul.f32 %v494_v23, %v1145_v7  ;;  %v500_v26 = vmul.f32 %v491_v22, %v1151_v10 }
 0x46a   : > { %v502_v28 = vpop.permute.xlu0 %501  ;;  %v504_v29 = vpop.permute.xlu1 %503  ;;  %v528_v31 = vpack.c.bf16 %v468_v60, %v500_v26  ;;  %v527_v32 = vpack.c.bf16 %v467_v59, %v499_v25 }
 0x46c   : > { %547 = vmatprep.subr.bf16.mxu1 %v528_v31 }
 0x46d   : > { %548 = vmatpush1.bf16.msra.mxu1 %v527_v32 }
 0x46e   : > { %v508_v34 = vpop.permute.xlu0 %507  ;;  %549 = vmatprep.subr.bf16.mxu1 %v530_v33  ;;  %v510_v35 = vpop.permute.xlu1 %509 }
 0x46f   : > { %v513_v37 = vsel %vm341_vm3, %v502_v28, %v508_v34  ;;  %v516_v7 = vsel %vm341_vm3, %v508_v34, %v502_v28  ;;  %v514_v10 = vsel %vm341_vm3, %v504_v29, %v510_v35  ;;  %v517_v38 = vsel %vm341_vm3, %v510_v35, %v504_v29 }
 0x470   : > { %v519_v39 = vmul.f32 %v513_v37, %v1147_v8  ;;  %v520_v40 = vmul.f32 %v516_v7, %v1153_v11  ;;  %v521_v41 = vmul.f32 %v514_v10, %v1147_v8  ;;  %v522_v42 = vmul.f32 %v517_v38, %v1153_v11 }
 0x471   : > { %550 = vmatpush1.bf16.msra.mxu1 %v529_v36 }
 0x472   : > { %v506_v43 = vpop.permute.xlu0 %505  ;;  %v512_v44 = vpop.permute.xlu1 %511  ;;  %v532_v45 = vpack.c.bf16 %v522_v42, %v520_v40  ;;  %v531_v46 = vpack.c.bf16 %v521_v41, %v519_v39 }
 0x473   : > { %v515_v47 = vsel %vm341_vm3, %v506_v43, %v512_v44  ;;  %v518_v48 = vsel %vm341_vm3, %v512_v44, %v506_v43 }
 0x474   : > { %v523_v49 = vmul.f32 %v515_v47, %v1147_v8  ;;  %v524_v50 = vmul.f32 %v518_v48, %v1153_v11  ;;  %551 = vmatprep.subr.bf16.mxu1 %v532_v45 }
 0x475   : > { %552 = vmatpush1.bf16.msra.mxu1 %v531_v46 }
 0x476   : > { %v533_v51 = vpack.c.bf16 %v523_v49, %v523_v49  ;;  %v534_v52 = vpack.c.bf16 %v524_v50, %v524_v50 }
 0x478   : > { %730 = vmatprep.subr.msk.bf16.mxu1 %vm377_vm4, %v534_v52  ;;  %v540_v53 = vsel %vm377_vm4, %v533_v51, 0 }
 0x479   : > { %554 = vmatpush1.bf16.msra.mxu1 %v540_v53 }
 0x47c   : > { %731 = vmatmul.mubr.msk.bf16.vlgmr.msra.gmra.mrb[0].mxu1 %vm373_vm5, %v535_v54 }
 0x54f   : > { %v579_v12 = vpop.f32.mrb[0].mxu1 }
 0x550   : > { %v581_v55 = vpop.f32.mrb[1].mxu1 }
 0x551   : > { %v583_v8 = vpop.f32.mrb[2].mxu1  ;;  %v586_v56 = vadd.f32 %v581_v55, %v579_v12 }
 0x552   : > { %v584_v11 = vpop.f32.mrb[3].mxu1 }
 0x553   : > { %587 = vadd.xlane.f32.xlu0 %v586_v56 }
 0x569   : > { %603 = vperm.xlu0 %806, %v1248_v30  }
 0x56d   : > { %808 = vset.pattern.permute.xlu0 %v952_v58 }
 0x5e0   : > { %v588_v59 = vpop.xlane.xlu0 %587 }
 0x5e1   : > { %v589_v60 = vmul.f32 0.00390625, %v588_v59 }
 0x5e3   : > { %v590_v61 = vsub.f32 %v579_v12, %v589_v60  ;;  %v591_v62 = vsub.f32 %v581_v55, %v589_v60 }
 0x5e5   : > { %v592_v63 = vmul.f32 %v590_v61, %v590_v61  ;;  %v593_v0 = vmul.f32 %v591_v62, %v591_v62 }
 0x5e7   : > { %v594_v1 = vadd.f32 %v593_v0, %v592_v63 }
 0x5e8   : > { %v604_v27 = vpop.permute.xlu0 %603 }
 0x5e9   : > { %595 = vadd.xlane.f32.xlu1 %v594_v1 }
 0x5fa   : > { %609 = vperm.xlu1 %807, %v1248_v30  }
 0x676   : > { %v596_v2 = vpop.xlane.xlu1 %595 }
 0x677   : > { %v597_v18 = vmul.f32 0.00390625, %v596_v2 }
 0x679   : > { %v598_v24 = vadd.f32 1e-05, %v597_v18 }
 0x67a   : > { %v610_v6 = vpop.permute.xlu1 %609 }
 0x67b   : > { %811 = vrsqrt.f32 %v598_v24 }
 0x685   : > { %v812_v17 = vpop.eup %811 }
 0x686   : > { %v600_v3 = vmul.f32 %v812_v17, %v590_v61  ;;  %v601_v5 = vmul.f32 %v812_v17, %v591_v62 }
 0x688   : > { %v606_v9 = vmul.f32 %v604_v27, %v600_v3  ;;  %v607_v13 = vmul.f32 %v604_v27, %v601_v5 }
 0x68a   : > { %v612_v14 = vadd.f32 %v610_v6, %v606_v9  ;;  %v613_v15 = vadd.f32 %v610_v6, %v607_v13 }
 0x68c   : > { %vm614_vm8 = vcmp.ge.f32.partialorder %v612_v14, 0.0  ;;  %vm615_vm9 = vcmp.ge.f32.partialorder %v613_v15, 0.0  ;;  %v616_v30 = vmul.f32 0.01, %v612_v14  ;;  %v617_v4 = vmul.f32 0.01, %v613_v15 }
 0x68e   : > { %v618_v16 = vsel %vm614_vm8, %v612_v14, %v616_v30  ;;  %v619_v19 = vsel %vm615_vm9, %v613_v15, %v617_v4 }
 0x68f   : > { %620 = vst [vmem:[%s253_s7] sm:$0xff] %v618_v16  ;;  %621 = vst [vmem:[%s253_s7 + $0x8] sm:$0xff] %v619_v19 }
 0x690   : > { %884 = shalt.err (!%p881_p10)
}
 0x691   : > { %s885_s15 = scalar_lea.hbm %s1337_s28, 256  ;;  %s889_s10 = scalar_lea.hbm %s1386_s5, 512 }
 0x692   : > { %p886_p1 = scmp.ne.s32.totalorder %s1337_s28, %s885_s15  ;;  %p890_p3 = scmp.lt.u32.totalorder %s1337_s28, %s1386_s5 }
 0x693   : > { %p891_p11 = scmp.lt.u32.totalorder %s889_s10, %s885_s15  ;;  %p893_p6 = scmp.lt.u32.totalorder %s885_s15, %s1337_s28 }
 0x694   : > { %p887_p2 = pnand %p886_p1, %p1076_p8 }
 0x695   : > { %p892_p4 = por %p891_p11, %p890_p3 }
 0x696   : > { %p888_p7 = pneg %p887_p2 }
 0x697   : > { %p894_p9 = por %p893_p6, %p892_p4 }
 0x699   : > { %p895_p12 = pnand %p894_p9, %p888_p7 }
 0x69b   : > { %898 = shalt.err (!%p895_p12)
}
 0x69c   : > { %745 = dma.vmem_to_hbm [thread:$0]  (%p1076_p8), %s1339_s17, 256, %s1337_s28, %s623_s22  }
 0x69d PF: > { %s649_s12 = sand.u32 1, %s929_s18   ;;  %p1405_p13 = scmp.ne.s32.totalorder %s1391_s25, 0 }
 0x69e   : > { %p1406_p0 = scmp.ge.s32.totalorder %s941_s21, 2  ;;  %s650_s7 = scalar_lea.sflag [#allocation4], %s649_s12 }
 0x6a0   : > { %p756_p5 = pnand %p1406_p0, %p1405_p13 }
 0x6a2   : > { %924 = dma.done.wait (!%p756_p5), %s650_s7, 256  }
 0x6a3   : > { %926 = vsyncadd (!%p756_p5), %s650_s7, 4294967040  ;;  %p19_p10 = scmp.ge.s32.totalorder %s1032_s29, 4   ;;  %s1407_s18 = smov %s933_s19 }
 0x6a4   : > { %s1408_s19 = smov %s937_s20  ;;  %s1409_s20 = smov %s1068_s27 }
 0x6a5   : > { %s1410_s21 = smov %s1032_s29  ;;  %21 = sbr.rel (!%p19_p10) target bundleno = 6 (0x6), region = 89 }
 0x6ac   :  { %655 = vsyncpa [#allocation3], 1 }
 0x6ad   :  { %657 = vsyncpa [#allocation3 + $0x1], 1 }
 0x6ae   :  { %658 = vsyncpa [#allocation6], 1 }
 0x6af   :  { %659 = vsyncpa [#allocation4], 1 }
 0x6b0   :  { %661 = vsyncpa [#allocation4 + $0x1], 1 }

</bundles_post_ra>
